<compile_context>
chip_gen: v7x
topology: tpu7x:2x2x1
jax: 0.10.0
libtpu: 0.0.40
codegen_flags: <defaults>
</compile_context>

<pallas_src>
import jax
import jax.numpy as jnp
from jax.experimental import pallas as pl
from jax.experimental.pallas import tpu as pltpu


def _round_up(x, m):
    return ((x + m - 1) // m) * m


def _rope_kernel_aligned(pos_ref, inv_ref, cos_ref, sin_ref):
    # pos_ref: (t, 1) int32    inv_ref: (1, half) f32 with half % 128 == 0
    # cos_ref / sin_ref: (t, 2*half) in the output dtype
    half = inv_ref.shape[1]
    pos = pos_ref[...].astype(jnp.float32)            # in-kernel cast (VPU)
    freqs = pos * inv_ref[...]                        # (t, half) broadcast mul
    c = jnp.cos(freqs).astype(cos_ref.dtype)          # trig at half width only
    s = jnp.sin(freqs).astype(sin_ref.dtype)
    cos_ref[:, :half] = c                             # emb = cat([freqs, freqs], -1)
    cos_ref[:, half:] = c                             # aligned, unmasked half stores
    sin_ref[:, :half] = s
    sin_ref[:, half:] = s


def _rope_kernel_folded(pos_ref, inv_sel_ref, cos_ref, sin_ref):
    # pos_ref:     (t, r) int32  -- r consecutive logical rows folded into lanes.
    # inv_sel_ref: (r, r*dim) f32, inv_sel[g, g*dim + k] = cat([inv_freq]*2)[k],
    #              zeros elsewhere (tiny, resident).
    # cos_ref / sin_ref: (t, r*dim) -- lane-dense, one full-width store each.
    r = pos_ref.shape[1]
    pos = pos_ref[...].astype(jnp.float32)            # in-kernel cast (VPU)
    emb = pos[:, 0:1] * inv_sel_ref[0:1, :]
    for g in range(1, r):                             # exact f32 "matmul" on the VPU
        emb = emb + pos[:, g:g + 1] * inv_sel_ref[g:g + 1, :]
    cos_ref[...] = jnp.cos(emb).astype(cos_ref.dtype)
    sin_ref[...] = jnp.sin(emb).astype(sin_ref.dtype)


def _choose_block_rows(rows, row_bytes, target_rows):
    """Rows per grid step for a (rows, width) lane-dense output layout."""
    if rows <= 8:
        return rows                                    # one block == full extent
    t = max(8, min(target_rows, rows))
    # VMEM: 2 outputs x 2 pipeline buffers per step; stay well inside the
    # v7x 32 MiB default scoped limit (64 MiB physical per TC).
    budget = 24 * 1024 * 1024
    t = min(t, max(8, budget // max(2 * row_bytes, 1)))
    # Keep >= 4 grid steps when there is plenty of work so the "parallel"
    # axis can shard across both v7x TensorCores.
    if rows >= 256:
        t = min(t, max(8, -(-rows // 4)))
    return _round_up(t, 8)


def gemma_rotary_embedding(x, position_ids, inv_freq, *, tm=2048):
    """Returns (cos, sin), each (B, S, dim) in x.dtype (matches the torch module)."""
    B, S = position_ids.shape
    half = inv_freq.shape[0]
    dim = 2 * half
    M = B * S
    out_dtype = x.dtype
    dsize = jnp.dtype(out_dtype).itemsize

    pos_flat = position_ids.reshape(M).astype(jnp.int32)   # no wrapper f32 pre-cast
    inv_f32 = inv_freq.astype(jnp.float32)

    aligned = (half % 128 == 0)
    if aligned:
        rows, width, r = M, dim, 1                    # production path (dim=256)
    else:
        r = max(1, min(M, -(-128 // max(half, 1))))   # ceil(128 / half)
        while r > 1 and (M % r) != 0:                 # r must divide M (else shrink)
            r -= 1
        rows, width = M // r, r * dim

    row_bytes = width * dsize * 2                     # both outputs, per output row
    t = _choose_block_rows(rows, row_bytes, max(1, tm // r))
    grid = (pl.cdiv(rows, t),)
    cparams = pltpu.CompilerParams(dimension_semantics=("parallel",))
    out_shape = (jax.ShapeDtypeStruct((rows, width), out_dtype),
                 jax.ShapeDtypeStruct((rows, width), out_dtype))
    out_specs = [pl.BlockSpec((t, width), lambda i: (i, 0)),
                 pl.BlockSpec((t, width), lambda i: (i, 0))]

    if aligned:
        pos2d = pos_flat.reshape(rows, 1)
        inv2d = inv_f32.reshape(1, half)
        cos2d, sin2d = pl.pallas_call(
            _rope_kernel_aligned,
            out_shape=out_shape,
            grid_spec=pltpu.PrefetchScalarGridSpec(
                num_scalar_prefetch=0,
                grid=grid,
                in_specs=[pl.BlockSpec((t, 1), lambda i: (i, 0)),
                          pl.BlockSpec((1, half), lambda i: (0, 0))],
                out_specs=out_specs,
            ),
            compiler_params=cparams,
        )(pos2d, inv2d)
    else:
        pos2d = pos_flat.reshape(rows, r)
        # (r, r*dim) selector: row g carries cat([inv_freq, inv_freq]) in lanes
        # [g*dim, (g+1)*dim) and zeros elsewhere. Tiny and resident in VMEM.
        inv_cat = jnp.concatenate([inv_f32, inv_f32])                       # (dim,)
        lane_group = jnp.arange(width, dtype=jnp.int32) // dim              # (width,)
        inv_sel = jnp.where(
            lane_group[None, :] == jnp.arange(r, dtype=jnp.int32)[:, None],
            jnp.tile(inv_cat, r)[None, :], 0.0).astype(jnp.float32)         # (r, width)
        cos2d, sin2d = pl.pallas_call(
            _rope_kernel_folded,
            out_shape=out_shape,
            grid_spec=pltpu.PrefetchScalarGridSpec(
                num_scalar_prefetch=0,
                grid=grid,
                in_specs=[pl.BlockSpec((t, r), lambda i: (i, 0)),
                          pl.BlockSpec((r, width), lambda i: (0, 0))],
                out_specs=out_specs,
            ),
            compiler_params=cparams,
        )(pos2d, inv_sel)

    # (rows, width) -> (B, S, dim) is a contiguous (free) reshape in both layouts.
    cos = cos2d.reshape(B, S, dim)
    sin = sin2d.reshape(B, S, dim)
    return cos, sin


if __name__ == "__main__":
    # Small config consistent with the module: batch=2, seq=8, rotary dim=32.
    B, S, dim = 2, 8, 32
    base = 10000.0
    max_pos = 2048

    key = jax.random.PRNGKey(0)
    k_x, k_p = jax.random.split(key, 2)
    x = jax.random.normal(k_x, (B, S, dim), dtype=jnp.float32)   # only dtype consumed
    position_ids = jax.random.randint(k_p, (B, S), 0, max_pos, dtype=jnp.int32)

    def ref(pos, inv, dtype):
        freqs = pos[:, :, None].astype(jnp.float32) * inv[None, None, :]
        emb = jnp.concatenate([freqs, freqs], axis=-1)
        return jnp.cos(emb).astype(dtype), jnp.sin(emb).astype(dtype)

    # Exercise both paths: small dim=32 (lane-folded) and Gemma's prod dim=256 (aligned).
    for d in (dim, 256):
        inv_freq = 1.0 / (base ** (jnp.arange(0, d, 2, dtype=jnp.float32) / d))
        xd = x if d == dim else jnp.zeros((B, S, d), dtype=x.dtype)
        cos, sin = gemma_rotary_embedding(xd, position_ids, inv_freq)
        cos, sin = jax.block_until_ready((cos, sin))
        ref_cos, ref_sin = ref(position_ids, inv_freq, x.dtype)
        assert cos.shape == (B, S, d) and sin.shape == (B, S, d)
        assert jnp.allclose(cos, ref_cos, atol=2e-3, rtol=0), f"cos mismatch (dim={d})"
        assert jnp.allclose(sin, ref_sin, atol=2e-3, rtol=0), f"sin mismatch (dim={d})"

    print("KERNEL_OK")
</pallas_src>

<mosaic_0001>
module attributes {stable_mosaic.version = 11 : i64} {
  func.func @_rope_kernel_folded(%arg0: i32, %arg1: memref<2x8xi32, #tpu.memory_space<vmem>>, %arg2: memref<8x256xf32, #tpu.memory_space<vmem>>, %arg3: memref<2x256xf32, #tpu.memory_space<vmem>>, %arg4: memref<2x256xf32, #tpu.memory_space<vmem>>) attributes {dimension_semantics = [#tpu.dimension_semantics<parallel>], iteration_bounds = array<i64: 1>, scalar_prefetch = 0 : i64, scratch_operands = 0 : i64, tpu.core_type = #tpu.core_type<tc>, window_params = [{transform_indices = @transform_0, window_bounds = array<i64: 2, 8>}, {pipeline_mode = #tpu.pipeline_mode<synchronous>, transform_indices = @transform_1, window_bounds = array<i64: 8, 256>}, {transform_indices = @transform_2, window_bounds = array<i64: 2, 256>}, {transform_indices = @transform_3, window_bounds = array<i64: 2, 256>}]} {
    %c0 = arith.constant 0 : index
    %c0_0 = arith.constant 0 : index
    %0 = vector.load %arg1[%c0, %c0_0] : memref<2x8xi32, #tpu.memory_space<vmem>>, vector<2x8xi32>
    %1 = arith.sitofp %0 : vector<2x8xi32> to vector<2x8xf32>
    %2 = vector.extract_strided_slice %1 {offsets = [0, 0], sizes = [2, 1], strides = [1, 1]} : vector<2x8xf32> to vector<2x1xf32>
    %c0_1 = arith.constant 0 : index
    %c0_2 = arith.constant 0 : index
    %3 = vector.load %arg2[%c0_1, %c0_2] : memref<8x256xf32, #tpu.memory_space<vmem>>, vector<1x256xf32>
    %4 = vector.broadcast %2 : vector<2x1xf32> to vector<2x256xf32>
    %5 = vector.broadcast %3 : vector<1x256xf32> to vector<2x256xf32>
    %6 = arith.mulf %4, %5 : vector<2x256xf32>
    %7 = vector.extract_strided_slice %1 {offsets = [0, 1], sizes = [2, 1], strides = [1, 1]} : vector<2x8xf32> to vector<2x1xf32>
    %c1 = arith.constant 1 : index
    %c0_3 = arith.constant 0 : index
    %8 = vector.load %arg2[%c1, %c0_3] : memref<8x256xf32, #tpu.memory_space<vmem>>, vector<1x256xf32>
    %9 = vector.broadcast %7 : vector<2x1xf32> to vector<2x256xf32>
    %10 = vector.broadcast %8 : vector<1x256xf32> to vector<2x256xf32>
    %11 = arith.mulf %9, %10 : vector<2x256xf32>
    %12 = arith.addf %6, %11 : vector<2x256xf32>
    %13 = vector.extract_strided_slice %1 {offsets = [0, 2], sizes = [2, 1], strides = [1, 1]} : vector<2x8xf32> to vector<2x1xf32>
    %c2 = arith.constant 2 : index
    %c0_4 = arith.constant 0 : index
    %14 = vector.load %arg2[%c2, %c0_4] : memref<8x256xf32, #tpu.memory_space<vmem>>, vector<1x256xf32>
    %15 = vector.broadcast %13 : vector<2x1xf32> to vector<2x256xf32>
    %16 = vector.broadcast %14 : vector<1x256xf32> to vector<2x256xf32>
    %17 = arith.mulf %15, %16 : vector<2x256xf32>
    %18 = arith.addf %12, %17 : vector<2x256xf32>
    %19 = vector.extract_strided_slice %1 {offsets = [0, 3], sizes = [2, 1], strides = [1, 1]} : vector<2x8xf32> to vector<2x1xf32>
    %c3 = arith.constant 3 : index
    %c0_5 = arith.constant 0 : index
    %20 = vector.load %arg2[%c3, %c0_5] : memref<8x256xf32, #tpu.memory_space<vmem>>, vector<1x256xf32>
    %21 = vector.broadcast %19 : vector<2x1xf32> to vector<2x256xf32>
    %22 = vector.broadcast %20 : vector<1x256xf32> to vector<2x256xf32>
    %23 = arith.mulf %21, %22 : vector<2x256xf32>
    %24 = arith.addf %18, %23 : vector<2x256xf32>
    %25 = vector.extract_strided_slice %1 {offsets = [0, 4], sizes = [2, 1], strides = [1, 1]} : vector<2x8xf32> to vector<2x1xf32>
    %c4 = arith.constant 4 : index
    %c0_6 = arith.constant 0 : index
    %26 = vector.load %arg2[%c4, %c0_6] : memref<8x256xf32, #tpu.memory_space<vmem>>, vector<1x256xf32>
    %27 = vector.broadcast %25 : vector<2x1xf32> to vector<2x256xf32>
    %28 = vector.broadcast %26 : vector<1x256xf32> to vector<2x256xf32>
    %29 = arith.mulf %27, %28 : vector<2x256xf32>
    %30 = arith.addf %24, %29 : vector<2x256xf32>
    %31 = vector.extract_strided_slice %1 {offsets = [0, 5], sizes = [2, 1], strides = [1, 1]} : vector<2x8xf32> to vector<2x1xf32>
    %c5 = arith.constant 5 : index
    %c0_7 = arith.constant 0 : index
    %32 = vector.load %arg2[%c5, %c0_7] : memref<8x256xf32, #tpu.memory_space<vmem>>, vector<1x256xf32>
    %33 = vector.broadcast %31 : vector<2x1xf32> to vector<2x256xf32>
    %34 = vector.broadcast %32 : vector<1x256xf32> to vector<2x256xf32>
    %35 = arith.mulf %33, %34 : vector<2x256xf32>
    %36 = arith.addf %30, %35 : vector<2x256xf32>
    %37 = vector.extract_strided_slice %1 {offsets = [0, 6], sizes = [2, 1], strides = [1, 1]} : vector<2x8xf32> to vector<2x1xf32>
    %c6 = arith.constant 6 : index
    %c0_8 = arith.constant 0 : index
    %38 = vector.load %arg2[%c6, %c0_8] : memref<8x256xf32, #tpu.memory_space<vmem>>, vector<1x256xf32>
    %39 = vector.broadcast %37 : vector<2x1xf32> to vector<2x256xf32>
    %40 = vector.broadcast %38 : vector<1x256xf32> to vector<2x256xf32>
    %41 = arith.mulf %39, %40 : vector<2x256xf32>
    %42 = arith.addf %36, %41 : vector<2x256xf32>
    %43 = vector.extract_strided_slice %1 {offsets = [0, 7], sizes = [2, 1], strides = [1, 1]} : vector<2x8xf32> to vector<2x1xf32>
    %c7 = arith.constant 7 : index
    %c0_9 = arith.constant 0 : index
    %44 = vector.load %arg2[%c7, %c0_9] : memref<8x256xf32, #tpu.memory_space<vmem>>, vector<1x256xf32>
    %45 = vector.broadcast %43 : vector<2x1xf32> to vector<2x256xf32>
    %46 = vector.broadcast %44 : vector<1x256xf32> to vector<2x256xf32>
    %47 = arith.mulf %45, %46 : vector<2x256xf32>
    %48 = arith.addf %42, %47 : vector<2x256xf32>
    %49 = math.cos %48 : vector<2x256xf32>
    %c0_10 = arith.constant 0 : index
    %c0_11 = arith.constant 0 : index
    %50 = vector.load %arg3[%c0_10, %c0_11] : memref<2x256xf32, #tpu.memory_space<vmem>>, vector<2x256xf32>
    tpu.vector_store %arg3[%c0_10, %c0_11], %49 {strides = array<i32>} : memref<2x256xf32, #tpu.memory_space<vmem>>, vector<2x256xf32>,
    %51 = math.sin %48 : vector<2x256xf32>
    %c0_12 = arith.constant 0 : index
    %c0_13 = arith.constant 0 : index
    %52 = vector.load %arg4[%c0_12, %c0_13] : memref<2x256xf32, #tpu.memory_space<vmem>>, vector<2x256xf32>
    tpu.vector_store %arg4[%c0_12, %c0_13], %51 {strides = array<i32>} : memref<2x256xf32, #tpu.memory_space<vmem>>, vector<2x256xf32>,
    return
  }
  func.func @transform_0(%arg0: i32) -> (i32, i32) {
    %c0_i32 = arith.constant 0 : i32
    %c0_i32_0 = arith.constant 0 : i32
    return %arg0, %c0_i32 : i32, i32
  }
  func.func @transform_1(%arg0: i32) -> (i32, i32) {
    %c0_i32 = arith.constant 0 : i32
    %c0_i32_0 = arith.constant 0 : i32
    %c0_i32_1 = arith.constant 0 : i32
    return %c0_i32, %c0_i32_0 : i32, i32
  }
  func.func @transform_2(%arg0: i32) -> (i32, i32) {
    %c0_i32 = arith.constant 0 : i32
    %c0_i32_0 = arith.constant 0 : i32
    return %arg0, %c0_i32 : i32, i32
  }
  func.func @transform_3(%arg0: i32) -> (i32, i32) {
    %c0_i32 = arith.constant 0 : i32
    %c0_i32_0 = arith.constant 0 : i32
    return %arg0, %c0_i32 : i32, i32
  }
}

</mosaic_0001>

<bundles_post_ra>
// kernel: tpu_custom_call.1
= control target key start
LH: loop header
LB: loop body
LE: loop exit
PB: predicated region body
PF: predicated region fallthrough
CT: control target
= control target key end

     0   :  { %9 = vsyncpa [#allocation3], 0  ;;  %s985_s0 = inlined_call_operand.hbm [shape: s32[2,8], index: 0, kind: input, shape index: {}]   ;;  %s986_s1 = inlined_call_operand.hbm [shape: f32[8,256], index: 1, kind: input, shape index: {}]   ;;  %s987_s2 = inlined_call_operand.hbm [shape: f32[2,256], index: 2, kind: output, shape index: {0}]   ;;  %s988_s3 = inlined_call_operand.hbm [shape: f32[2,256], index: 3, kind: output, shape index: {1}]  }
   0x1   :  { %10 = vsyncpa [#allocation6], 0 }
   0x2   :  { %11 = vsyncpa [#allocation4], 0 }
   0x3   :  { %12 = vsyncpa [#allocation9], 0  ;;  %s832_s12 = smov [#allocation2]   ;;  %s833_s14 = smov [#allocation5]  }
   0x4   :  { %s19_s13 = sshll.u32 %s832_s12, 4  ;;  %s29_s15 = sshll.u32 %s833_s14, 4  ;;  %s20_s13 = int_to_ptr.vmem [resolvable:$true] %s19_s13  ;;  %s30_s15 = int_to_ptr.vmem [resolvable:$true] %s29_s15 }
   0x5   :  { %s736_s18 = scalar_lea.hbm %s985_s0, 32 }
   0x6   :  { %p737_p0 = scmp.ne.s32.totalorder %s985_s0, %s736_s18  ;;  %p740_p1 = scmp.lt.u32.totalorder %s736_s18, %s985_s0 }
   0x8   :  { %p742_p2 = pnand %p740_p1, %p737_p0 }
   0xa   :  { %745 = shalt.err (!%p742_p2)
}
   0xb   :  { %s746_s23 = scalar_lea.vmem %s20_s13, 32  ;;  %p751_p4 = scmp.lt.s32.totalorder %s20_s13, %s20_s13 }
   0xc   :  { %p747_p3 = scmp.ne.s32.totalorder %s20_s13, %s746_s23  ;;  %p752_p5 = scmp.lt.s32.totalorder %s746_s23, %s746_s23 }
   0xe   :  { %p753_p6 = por %p752_p5, %p751_p4 }
  0x10   :  { %p754_p7 = pnand %p753_p6, %p747_p3 }
  0x12   :  { %757 = shalt.err (!%p754_p7)
}
  0x13   :  { %22 = dma.hbm_to_vmem [thread:$0]  %s985_s0, 32, %s20_s13, [#allocation3]  }
  0x14   :  { %s758_s28 = scalar_lea.hbm %s986_s1, 256 }
  0x15   :  { %p759_p8 = scmp.ne.s32.totalorder %s986_s1, %s758_s28  ;;  %p762_p9 = scmp.lt.u32.totalorder %s758_s28, %s986_s1 }
  0x17   :  { %p764_p10 = pnand %p762_p9, %p759_p8 }
  0x19   :  { %767 = shalt.err (!%p764_p10)
}
  0x1a   :  { %s768_s6 = scalar_lea.vmem %s30_s15, 256  ;;  %p773_p12 = scmp.lt.s32.totalorder %s30_s15, %s30_s15 }
  0x1b   :  { %p769_p11 = scmp.ne.s32.totalorder %s30_s15, %s768_s6  ;;  %p774_p13 = scmp.lt.s32.totalorder %s768_s6, %s768_s6 }
  0x1d   :  { %p775_p0 = por %p774_p13, %p773_p12 }
  0x1f   :  { %p776_p1 = pnand %p775_p0, %p769_p11 }
  0x21   :  { %779 = shalt.err (!%p776_p1)
}
  0x22   :  { %32 = dma.hbm_to_vmem [thread:$0]  %s986_s1, 256, %s30_s15, [#allocation6]  }
  0x23   :  { %824 = dma.done.wait [#allocation3], 32  }
  0x24   :  { %825 = vsyncadd [#allocation3], 4294967264 }
  0x25   :  { %826 = dma.done.wait [#allocation6], 256  }
  0x26   :  { %827 = vsyncadd [#allocation6], 4294967040  ;;  %v834_v0 = vmov 2   ;;  %v835_v1 = vmov 0   ;;  %v39_v2 = vld [vmem:[#allocation2] sm:$0x3]  ;;  %v48_v10 = vlaneseq }
  0x27   :  { %721 = vset.pattern.permute.xlu1 %v834_v0  ;;  %719 = vset.pattern.permute.xlu0 %v835_v1  ;;  %v40_v3 = vcvt.s32.f32 %v39_v2  ;;  %v836_v4 = vmov 3   ;;  %v837_v5 = vmov 1   ;;  %v838_v6 = vmov 4   ;;  %v41_v12 = vld [vmem:[#allocation5] ss:$8 sm:$0x3] }
  0x28   :  { %v839_v7 = vmov 5   ;;  %v840_v8 = vmov 6   ;;  %v841_v9 = vmov 7   ;;  %v49_v11 = vshrl.u32 %v48_v10, 7  ;;  %s848_s1 = smov [#allocation7]   ;;  %s849_s9 = smov [#allocation8]  }
  0x29   :  { %84 = vperm.xlu1 %721, %v40_v3   ;;  %44 = vperm.xlu0 %719, %v40_v3   ;;  %v61_v13 = vld [vmem:[#allocation5 + $0x1] ss:$8 sm:$0x3]  ;;  %v82_v18 = vld [vmem:[#allocation5 + $0x2] ss:$8 sm:$0x3] }
  0x2a   :  { %v50_v14 = vsub.s32 0, %v49_v11  ;;  %v54_v15 = vsub.s32 1, %v49_v11  ;;  %v103_v21 = vld [vmem:[#allocation5 + $0x3] ss:$8 sm:$0x3]  ;;  %s651_s8 = sshll.u32 %s848_s1, 4  ;;  %s652_s8 = int_to_ptr.vmem [resolvable:$true] %s651_s8 }
  0x2b   :  { %v124_v26 = vld [vmem:[#allocation5 + $0x4] ss:$8 sm:$0x3]  ;;  %v145_v35 = vld [vmem:[#allocation5 + $0x5] ss:$8 sm:$0x3]  ;;  %p785_p3 = scmp.lt.s32.totalorder %s652_s8, %s652_s8 }
  0x2c   :  { %v51_v19 = vrot.slane %v41_v12, %v50_v14  ;;  %v55_v20 = vrot.slane %v41_v12, %v54_v15  ;;  %v70_v22 = vrot.slane %v61_v13, %v50_v14  ;;  %v74_v23 = vrot.slane %v61_v13, %v54_v15  ;;  %v166_v50 = vld [vmem:[#allocation5 + $0x6] ss:$8 sm:$0x3]  ;;  %v187_v59 = vld [vmem:[#allocation5 + $0x7] ss:$8 sm:$0x3] }
  0x2d   :  { %722 = vset.pattern.permute.xlu1 %v836_v4  ;;  %720 = vset.pattern.permute.xlu0 %v837_v5  ;;  %v91_v24 = vrot.slane %v82_v18, %v50_v14  ;;  %v95_v25 = vrot.slane %v82_v18, %v54_v15  ;;  %v112_v27 = vrot.slane %v103_v21, %v50_v14  ;;  %s661_s10 = sshll.u32 %s849_s9, 4  ;;  %s780_s11 = scalar_lea.vmem %s652_s8, 64  ;;  %s662_s10 = int_to_ptr.vmem [resolvable:$true] %s661_s10 }
  0x2e   :  { %105 = vperm.xlu1 %722, %v40_v3   ;;  %63 = vperm.xlu0 %720, %v40_v3   ;;  %v116_v28 = vrot.slane %v103_v21, %v54_v15  ;;  %v133_v36 = vrot.slane %v124_v26, %v50_v14  ;;  %v137_v37 = vrot.slane %v124_v26, %v54_v15  ;;  %p781_p2 = scmp.ne.s32.totalorder %s652_s8, %s780_s11  ;;  %p786_p4 = scmp.lt.s32.totalorder %s780_s11, %s780_s11 }
  0x2f   :  { %v154_v42 = vrot.slane %v145_v35, %v50_v14  ;;  %v158_v43 = vrot.slane %v145_v35, %v54_v15  ;;  %v175_v57 = vrot.slane %v166_v50, %v50_v14  ;;  %v179_v58 = vrot.slane %v166_v50, %v54_v15 }
  0x30   :  { %v196_v63 = vrot.slane %v187_v59, %v50_v14  ;;  %v200_v0 = vrot.slane %v187_v59, %v54_v15  ;;  %p787_p5 = por %p786_p4, %p785_p3 }
  0x32   :  { %723 = vset.pattern.permute.xlu1 %v838_v6  ;;  %724 = vset.pattern.permute.xlu0 %v839_v7  ;;  %p788_p6 = pnand %p787_p5, %p781_p2 }
  0x33   :  { %126 = vperm.xlu1 %723, %v40_v3   ;;  %147 = vperm.xlu0 %724, %v40_v3  }
  0x37   :  { %725 = vset.pattern.permute.xlu1 %v840_v8  ;;  %727 = vset.pattern.permute.xlu0 %v841_v9 }
  0x38   :  { %168 = vperm.xlu1 %725, %v40_v3  }
  0x3c   :  { %726 = vset.pattern.permute.xlu1 %v841_v9 }
  0x3d   :  { %189 = vperm.xlu1 %726, %v40_v3  }
  0xa8   :  { %v85_v16 = vpop.permute.xlu1 %84  ;;  %v45_v17 = vpop.permute.xlu0 %44 }
  0xa9   :  { %v58_v31 = vmul.f32 %v51_v19, %v45_v17  ;;  %v59_v32 = vmul.f32 %v55_v20, %v45_v17  ;;  %v98_v38 = vmul.f32 %v91_v24, %v85_v16  ;;  %v99_v39 = vmul.f32 %v95_v25, %v85_v16 }
  0xad   :  { %v106_v29 = vpop.permute.xlu1 %105  ;;  %v64_v30 = vpop.permute.xlu0 %63 }
  0xae   :  { %v77_v33 = vmul.f32 %v70_v22, %v64_v30  ;;  %v78_v34 = vmul.f32 %v74_v23, %v64_v30  ;;  %v119_v44 = vmul.f32 %v112_v27, %v106_v29  ;;  %v120_v45 = vmul.f32 %v116_v28, %v106_v29 }
  0xb0   :  { %v79_v40 = vadd.f32 %v77_v33, %v58_v31  ;;  %v80_v41 = vadd.f32 %v78_v34, %v59_v32  ;;  %v842_v32 = vmov 683565275  }
  0xb2   :  { %v100_v46 = vadd.f32 %v98_v38, %v79_v40  ;;  %v101_v47 = vadd.f32 %v99_v39, %v80_v41  ;;  %v127_v48 = vpop.permute.xlu1 %126  ;;  %v148_v49 = vpop.permute.xlu0 %147  ;;  %v844_v38 = vmov 2131351028   ;;  %v845_v40 = vmov 2102212464  }
  0xb3   :  { %v140_v51 = vmul.f32 %v133_v36, %v127_v48  ;;  %v141_v52 = vmul.f32 %v137_v37, %v127_v48  ;;  %v161_v55 = vmul.f32 %v154_v42, %v148_v49  ;;  %v162_v56 = vmul.f32 %v158_v43, %v148_v49 }
  0xb4   :  { %v121_v53 = vadd.f32 %v119_v44, %v100_v46  ;;  %v122_v54 = vadd.f32 %v120_v45, %v101_v47  ;;  %v843_v36 = vmov 2475754826   ;;  %v846_v42 = vmov 920167782  }
  0xb5   :  { %v847_v49 = vmov 1326507024  }
  0xb6   :  { %v142_v60 = vadd.f32 %v140_v51, %v121_v53  ;;  %v143_v61 = vadd.f32 %v141_v52, %v122_v54 }
  0xb7   :  { %v169_v62 = vpop.permute.xlu1 %168 }
  0xb8   :  { %v163_v1 = vadd.f32 %v161_v55, %v142_v60  ;;  %v164_v2 = vadd.f32 %v162_v56, %v143_v61  ;;  %v182_v3 = vmul.f32 %v175_v57, %v169_v62  ;;  %v183_v4 = vmul.f32 %v179_v58, %v169_v62 }
  0xba   :  { %v184_v6 = vadd.f32 %v182_v3, %v163_v1  ;;  %v185_v7 = vadd.f32 %v183_v4, %v164_v2 }
  0xbc   :  { %v190_v5 = vpop.permute.xlu1 %189 }
  0xbd   :  { %v203_v8 = vmul.f32 %v196_v63, %v190_v5  ;;  %v204_v9 = vmul.f32 %v200_v0, %v190_v5 }
  0xbf   :  { %v894_v10 = vadd.f32 %v203_v8, %v184_v6  ;;  %v896_v11 = vadd.f32 %v204_v9, %v185_v7 }
  0xc1   :  { %v207_v12 = vand.u32 2147483647, %v894_v10  ;;  %v210_v13 = vand.u32 2139095040, %v894_v10  ;;  %v313_v14 = vand.u32 2139095040, %v896_v11  ;;  %v310_v17 = vand.u32 2147483647, %v896_v11 }
  0xc2   :  { %vm209_vm14 = vcmp.lt.s32.totalorder %v894_v10, 0 }
  0xc3   :  { %v211_v15 = vshrl.u32 %v210_v13, 23  ;;  %v214_v16 = vand.u32 8388607, %v207_v12  ;;  %v314_v18 = vshrl.u32 %v313_v14, 23  ;;  %v906_v23 = vand.u32 8388607, %v310_v17 }
  0xc4   :  { %vm208_vm15 = vcmp.le.f32.partialorder %v207_v12, 0.7853982 }
  0xc5   :  { %v675_v19 = vadd.s32 4294967169, %v211_v15  ;;  %v679_v20 = vadd.s32 4294967169, %v314_v18  ;;  %v215_v22 = vor.u32 8388608, %v214_v16  ;;  %v318_v30 = vor.u32 8388608, %v906_v23 }
  0xc7   :  { %v217_v21 = vadd.s32 1, %v675_v19  ;;  %v320_v24 = vadd.s32 1, %v679_v20  ;;  %v908_v29 = vshll.u32 %v215_v22, 8 }
  0xc9   :  { %vm218_vm0 = vcmp.gt.s32.totalorder %v217_v21, 0  ;;  %vm321_vm1 = vcmp.gt.s32.totalorder %v320_v24, 0 }
  0xca   :  { %v219_v25 = vsel %vm218_vm0, %v217_v21, 0  ;;  %v322_v28 = vsel %vm321_vm1, %v320_v24, 0  ;;  %v358_v24 = vshll.u32 %v318_v30, 8  ;;  %vm312_vm0 = vcmp.lt.s32.totalorder %v896_v11, 0 }
  0xcb   :  { %v220_v26 = vshrl.u32 %v219_v25, 5  ;;  %v221_v27 = vand.u32 31, %v219_v25  ;;  %v911_v34 = vshrl.u32 %v322_v28, 5  ;;  %v324_v35 = vand.u32 31, %v322_v28 }
  0xcc   :  { %vm311_vm1 = vcmp.le.f32.partialorder %v310_v17, 0.7853982 }
  0xcd   :  { %v222_v31 = vsub.s32 32, %v221_v27  ;;  %v224_v33 = vshll.u32 %v842_v32, %v221_v27  ;;  %v227_v37 = vshll.u32 %v843_v36, %v221_v27  ;;  %v230_v39 = vshll.u32 %v844_v38, %v221_v27 }
  0xce   :  { %v233_v41 = vshll.u32 %v845_v40, %v221_v27  ;;  %v236_v43 = vshll.u32 %v846_v42, %v221_v27  ;;  %vm239_vm2 = vcmp.lt.s32.totalorder %v220_v26, 1  ;;  %vm240_vm3 = vcmp.lt.s32.totalorder %v220_v26, 2 }
  0xcf   :  { %v225_v44 = vshrl.u32 %v843_v36, %v222_v31  ;;  %v228_v45 = vshrl.u32 %v844_v38, %v222_v31  ;;  %v231_v46 = vshrl.u32 %v845_v40, %v222_v31  ;;  %v223_v47 = vshrl.u32 %v842_v32, %v222_v31 }
  0xd0   :  { %v234_v48 = vshrl.u32 %v846_v42, %v222_v31  ;;  %v237_v50 = vshrl.u32 %v847_v49, %v222_v31  ;;  %v325_v54 = vsub.s32 32, %v324_v35  ;;  %vm241_vm4 = vcmp.lt.s32.totalorder %v220_v26, 3 }
  0xd1   :  { %v226_v51 = vor.u32 %v225_v44, %v224_v33  ;;  %v229_v52 = vor.u32 %v228_v45, %v227_v37  ;;  %v232_v53 = vor.u32 %v231_v46, %v230_v39  ;;  %vm242_vm5 = vcmp.lt.s32.totalorder %v220_v26, 4 }
  0xd2   :  { %v235_v55 = vor.u32 %v234_v48, %v233_v41  ;;  %v238_v56 = vor.u32 %v237_v50, %v236_v43  ;;  %v327_v0 = vshll.u32 %v842_v32, %v324_v35  ;;  %v328_v3 = vshrl.u32 %v843_v36, %v325_v54 }
  0xd3   :  { %v243_v57 = vsel %vm239_vm2, %v223_v47, %v226_v51  ;;  %v244_v58 = vsel %vm242_vm5, %v232_v53, 2102212464  ;;  %v247_v59 = vsel %vm239_vm2, %v226_v51, %v229_v52  ;;  %v251_v60 = vsel %vm239_vm2, %v229_v52, %v232_v53 }
  0xd4   :  { %v245_v61 = vsel %vm241_vm4, %v229_v52, %v244_v58  ;;  %v248_v62 = vsel %vm242_vm5, %v235_v55, 920167782  ;;  %v252_v63 = vsel %vm242_vm5, %v238_v56, 1326507024  ;;  %v330_v4 = vshll.u32 %v843_v36, %v324_v35 }
  0xd5   :  { %v249_v1 = vsel %vm241_vm4, %v232_v53, %v248_v62  ;;  %v253_v2 = vsel %vm241_vm4, %v235_v55, %v252_v63  ;;  %v246_v5 = vsel %vm240_vm3, %v243_v57, %v245_v61  ;;  %v331_v8 = vshrl.u32 %v844_v38, %v325_v54 }
  0xd6   :  { %v250_v6 = vsel %vm240_vm3, %v247_v59, %v249_v1  ;;  %v254_v7 = vsel %vm240_vm3, %v251_v60, %v253_v2  ;;  %v329_v16 = vor.u32 %v328_v3, %v327_v0  ;;  %v333_v19 = vshll.u32 %v844_v38, %v324_v35 }
  0xd7   :  { %v920_v9 = vmul.u32.u64.low %v908_v29, %v254_v7  ;;  %v921_v13 = vmul.u32.u64.high %v908_v29, %v254_v7, %v920_v9  ;;  %v924_v14 = vmul.u32.u64.low %v908_v29, %v250_v6  ;;  %v925_v15 = vmul.u32.u64.high %v908_v29, %v250_v6, %v924_v14 }
  0xd8   :  { %v332_v18 = vor.u32 %v331_v8, %v330_v4  ;;  %v334_v20 = vshrl.u32 %v845_v40, %v325_v54  ;;  %v336_v21 = vshll.u32 %v845_v40, %v324_v35  ;;  %v337_v22 = vshrl.u32 %v846_v42, %v325_v54 }
  0xd9   :  { %v340_v23 = vshrl.u32 %v847_v49, %v325_v54  ;;  %v262_v25 = vmul.u32 %v908_v29, %v246_v5  ;;  %v326_v26 = vshrl.u32 %v842_v32, %v325_v54  ;;  %v339_v28 = vshll.u32 %v846_v42, %v324_v35 }
  0xda   :  { %v335_v27 = vor.u32 %v334_v20, %v333_v19  ;;  %vm264_vm6 = vc.u32 %v921_v13, %v924_v14  ;;  %v265_v31 = vadd.s32 1, %v925_v15  ;;  %v338_v33 = vor.u32 %v337_v22, %v336_v21 }
  0xdb   :  { %vm342_vm7 = vcmp.lt.s32.totalorder %v911_v34, 1  ;;  %v341_v36 = vor.u32 %v340_v23, %v339_v28  ;;  %vm344_vm8 = vcmp.lt.s32.totalorder %v911_v34, 3  ;;  %vm345_vm9 = vcmp.lt.s32.totalorder %v911_v34, 4 }
  0xdc   :  { %v350_v37 = vsel %vm342_vm7, %v329_v16, %v332_v18  ;;  %v266_v30 = vsel %vm264_vm6, %v265_v31, %v925_v15  ;;  %v347_v38 = vsel %vm345_vm9, %v335_v27, 2102212464  ;;  %v351_v29 = vsel %vm345_vm9, %v338_v33, 920167782 }
  0xdd   :  { %v354_v32 = vsel %vm342_vm7, %v332_v18, %v335_v27  ;;  %v267_v39 = vadd.s32 %v266_v30, %v262_v25  ;;  %vm343_vm10 = vcmp.lt.s32.totalorder %v911_v34, 2  ;;  %v352_v35 = vsel %vm344_vm8, %v335_v27, %v351_v29 }
  0xde   :  { %v355_v40 = vsel %vm345_vm9, %v341_v36, 1326507024  ;;  %v346_v41 = vsel %vm342_vm7, %v326_v26, %v329_v16  ;;  %v348_v42 = vsel %vm344_vm8, %v332_v18, %v347_v38  ;;  %v353_v43 = vsel %vm343_vm10, %v350_v37, %v352_v35 }
  0xdf   :  { %v356_v44 = vsel %vm344_vm8, %v338_v33, %v355_v40  ;;  %v268_v45 = vadd.s32 536870912, %v267_v39  ;;  %v935_v47 = vmul.u32.u64.low %v358_v24, %v353_v43  ;;  %v936_v48 = vmul.u32.u64.high %v358_v24, %v353_v43, %v935_v47 }
  0xe0   :  { %v357_v46 = vsel %vm343_vm10, %v354_v32, %v356_v44  ;;  %v349_v52 = vsel %vm343_vm10, %v346_v41, %v348_v42  ;;  %v263_v4 = vadd.s32 %v924_v14, %v921_v13  ;;  %vm299_vm6 = vweird.f32 %v894_v10 }
  0xe1   :  { %v938_v49 = vmul.u32.u64.low %v358_v24, %v357_v46  ;;  %v939_v50 = vmul.u32.u64.high %v358_v24, %v357_v46, %v938_v49  ;;  %v269_v51 = vshrl.u32 %v268_v45, 30  ;;  %v368_v54 = vadd.s32 1, %v936_v48 }
  0xe2   :  { %v365_v34 = vmul.u32 %v358_v24, %v349_v52 }
  0xe3   :  { %v270_v53 = vshll.u32 %v269_v51, 30  ;;  %vm367_vm11 = vc.u32 %v939_v50, %v935_v47  ;;  %v366_v25 = vadd.s32 %v935_v47, %v939_v50  ;;  %v293_v38 = vsub.s32 4, %v269_v51 }
  0xe4   :  { %v369_v56 = vsel %vm367_vm11, %v368_v54, %v936_v48 }
  0xe5   :  { %v271_v55 = vsub.s32 %v267_v39, %v270_v53  ;;  %v370_v57 = vadd.s32 %v369_v56, %v365_v34  ;;  %v294_v40 = vsel %vm209_vm14, %v293_v38, %v269_v51 }
  0xe6   :  { %v296_v44 = vsel %vm208_vm15, 0, %v294_v40 }
  0xe7   :  { %v273_v58 = vsub.s32 0, %v271_v55  ;;  %v371_v59 = vadd.s32 536870912, %v370_v57  ;;  %v518_v47 = vadd.s32 3, %v296_v44  ;;  %v300_v51 = vand.u32 3, %v296_v44 }
  0xe9   :  { %v676_v60 = vmin.u32 %v273_v58, %v271_v55  ;;  %v372_v61 = vshrl.u32 %v371_v59, 30  ;;  %v519_v52 = vand.u32 3, %v518_v47  ;;  %vm302_vm2 = vcmp.eq.s32.totalorder %v300_v51, 0 }
  0xea   :  { %vm305_vm3 = vcmp.eq.s32.totalorder %v300_v51, 2  ;;  %vm301_vm7 = vcmp.lt.s32.totalorder %v300_v51, 2 }
  0xeb   :  { %v275_v62 = vclz %v676_v60  ;;  %v373_v63 = vshll.u32 %v372_v61, 30  ;;  %v396_v41 = vsub.s32 4, %v372_v61  ;;  %vm521_vm4 = vcmp.eq.s32.totalorder %v519_v52, 0 }
  0xec   :  { %vm524_vm5 = vcmp.eq.s32.totalorder %v519_v52, 2  ;;  %vm520_vm8 = vcmp.lt.s32.totalorder %v519_v52, 2 }
  0xed   :  { %v677_v0 = vadd.s32 4294967294, %v275_v62  ;;  %v374_v1 = vsub.s32 %v370_v57, %v373_v63  ;;  %v397_v45 = vsel %vm312_vm0, %v396_v41, %v372_v61 }
  0xee   :  { %v399_v48 = vsel %vm311_vm1, 0, %v397_v45 }
  0xef   :  { %vm678_vm12 = vcmp.lt.s32.totalorder %v677_v0, 0  ;;  %v376_v3 = vsub.s32 0, %v374_v1  ;;  %v622_v53 = vadd.s32 3, %v399_v48 }
  0xf0   :  { %v278_v2 = vsel %vm678_vm12, 0, %v677_v0 }
  0xf1   :  { %v279_v5 = vsub.s32 32, %v278_v2  ;;  %v283_v6 = vsub.s32 4294967266, %v278_v2  ;;  %v680_v7 = vmin.u32 %v376_v3, %v374_v1  ;;  %v280_v8 = vshll.u32 %v271_v55, %v278_v2 }
  0xf2   :  { %v403_v55 = vand.u32 3, %v399_v48  ;;  %v623_v56 = vand.u32 3, %v622_v53 }
  0xf3   :  { %v281_v9 = vshrl.u32 %v263_v4, %v279_v5  ;;  %v284_v15 = vadd.s32 127, %v283_v6  ;;  %v378_v16 = vclz %v680_v7 }
  0xf4   :  { %vm404_vm9 = vcmp.lt.s32.totalorder %v403_v55, 2  ;;  %vm405_vm10 = vcmp.eq.s32.totalorder %v403_v55, 0  ;;  %vm408_vm11 = vcmp.eq.s32.totalorder %v403_v55, 2  ;;  %vm628_vm12 = vcmp.eq.s32.totalorder %v623_v56, 2 }
  0xf5   :  { %v282_v18 = vor.u32 %v281_v9, %v280_v8  ;;  %v285_v19 = vshll.u32 %v284_v15, 23  ;;  %v681_v20 = vadd.s32 4294967294, %v378_v16 }
  0xf7   :  { %v286_v21 = vor.u32 4788187, %v285_v19  ;;  %vm682_vm13 = vcmp.lt.s32.totalorder %v681_v20, 0  ;;  %v289_v23 = vcvt.s32.f32 %v282_v18 }
  0xf8   :  { %v381_v24 = vsel %vm682_vm13, 0, %v681_v20  ;;  %vm624_vm13 = vcmp.lt.s32.totalorder %v623_v56, 2 }
  0xf9   :  { %v287_v22 = vand.u32 2147483647, %v286_v21  ;;  %v382_v26 = vsub.s32 32, %v381_v24  ;;  %v386_v27 = vsub.s32 4294967266, %v381_v24  ;;  %v383_v14 = vshll.u32 %v374_v1, %v381_v24 }
  0xfb   :  { %v290_v13 = vmul.f32 %v289_v23, %v287_v22  ;;  %v384_v28 = vshrl.u32 %v366_v25, %v382_v26  ;;  %v387_v31 = vadd.s32 127, %v386_v27 }
  0xfd   :  { %v291_v33 = vxor.u32 2147483648, %v290_v13  ;;  %v385_v36 = vor.u32 %v384_v28, %v383_v14  ;;  %v388_v37 = vshll.u32 %v387_v31, 23 }
  0xff   :  { %v292_v30 = vsel %vm209_vm14, %v291_v33, %v290_v13  ;;  %v389_v29 = vor.u32 4788187, %v388_v37  ;;  %v392_v35 = vcvt.s32.f32 %v385_v36  ;;  %vm625_vm14 = vcmp.eq.s32.totalorder %v623_v56, 0 }
 0x100   :  { %v295_v32 = vsel %vm208_vm15, %v894_v10, %v292_v30  ;;  %vm402_vm15 = vweird.f32 %v896_v11 }
 0x101   :  { %728 = vcosq.f32 %v295_v32  ;;  %v390_v39 = vand.u32 2147483647, %v389_v29 }
 0x102   :  { %730 = vsinq.f32 %v295_v32 }
 0x103   :  { %v393_v42 = vmul.f32 %v392_v35, %v390_v39 }
 0x105   :  { %v394_v43 = vxor.u32 2147483648, %v393_v42 }
 0x107   :  { %v395_v46 = vsel %vm312_vm0, %v394_v43, %v393_v42 }
 0x108   :  { %v398_v12 = vsel %vm311_vm1, %v896_v11, %v395_v46 }
 0x109   :  { %732 = vcosq.f32 %v398_v12 }
 0x10a   :  { %734 = vsinq.f32 %v398_v12 }
 0x10b   :  { %v729_v49 = vpop.eup %728 }
 0x10c   :  { %v731_v50 = vpop.eup %730  ;;  %v306_v34 = vxor.u32 2147483648, %v729_v49 }
 0x10d   :  { %v303_v54 = vxor.u32 2147483648, %v731_v50 }
 0x10e   :  { %v307_v57 = vsel %vm305_vm3, %v306_v34, %v731_v50  ;;  %v526_v59 = vsel %vm524_vm5, %v306_v34, %v731_v50 }
 0x10f   :  { %v304_v17 = vsel %vm302_vm2, %v729_v49, %v303_v54  ;;  %v523_v58 = vsel %vm521_vm4, %v729_v49, %v303_v54 }
 0x110   :  { %v308_v62 = vsel %vm301_vm7, %v304_v17, %v307_v57  ;;  %v527_v0 = vsel %vm520_vm8, %v523_v58, %v526_v59 }
 0x111   :  { %v309_v4 = vsel %vm299_vm6, nan, %v308_v62  ;;  %v528_v6 = vsel %vm299_vm6, nan, %v527_v0 }
 0x113   :  { %v733_v60 = vpop.eup %732 }
 0x114   :  { %v735_v61 = vpop.eup %734  ;;  %v409_v63 = vxor.u32 2147483648, %v733_v60 }
 0x115   :  { %v406_v1 = vxor.u32 2147483648, %v735_v61 }
 0x116   :  { %v410_v2 = vsel %vm408_vm11, %v409_v63, %v735_v61  ;;  %v630_v3 = vsel %vm628_vm12, %v409_v63, %v735_v61 }
 0x117   :  { %v407_v5 = vsel %vm405_vm10, %v733_v60, %v406_v1  ;;  %v627_v7 = vsel %vm625_vm14, %v733_v60, %v406_v1 }
 0x118   :  { %v411_v8 = vsel %vm404_vm9, %v407_v5, %v410_v2  ;;  %v631_v9 = vsel %vm624_vm13, %v627_v7, %v630_v3 }
 0x119   :  { %v412_v15 = vsel %vm402_vm15, nan, %v411_v8  ;;  %v632_v16 = vsel %vm402_vm15, nan, %v631_v9 }
 0x11a   :  { %v415_v18 = vcombine.low %v309_v4, %v412_v15  ;;  %v635_v19 = vcombine.low %v528_v6, %v632_v16 }
 0x11c   :  { %683 = vst.sshfl [vmem:[#allocation7] sm:$0x33 pattern:$0x76325410] %v415_v18 }
 0x11d   :  { %692 = vst.sshfl [vmem:[#allocation8] sm:$0x33 pattern:$0x76325410] %v635_v19 }
 0x11e   :  { %791 = shalt.err (!%p788_p6)
}
 0x11f   :  { %s792_s14 = scalar_lea.hbm %s987_s2, 64 }
 0x120   :  { %p793_p7 = scmp.ne.s32.totalorder %s987_s2, %s792_s14  ;;  %p796_p8 = scmp.lt.u32.totalorder %s792_s14, %s987_s2 }
 0x122   :  { %p798_p9 = pnand %p796_p8, %p793_p7 }
 0x124   :  { %801 = shalt.err (!%p798_p9)
}
 0x125   :  { %654 = dma.vmem_to_hbm [thread:$0]  %s652_s8, 64, %s987_s2, [#allocation4]  }
 0x126   :  { %s802_s21 = scalar_lea.vmem %s662_s10, 64  ;;  %p807_p11 = scmp.lt.s32.totalorder %s662_s10, %s662_s10 }
 0x127   :  { %p803_p10 = scmp.ne.s32.totalorder %s662_s10, %s802_s21  ;;  %p808_p12 = scmp.lt.s32.totalorder %s802_s21, %s802_s21 }
 0x129   :  { %p809_p13 = por %p808_p12, %p807_p11 }
 0x12b   :  { %p810_p0 = pnand %p809_p13, %p803_p10 }
 0x12d   :  { %813 = shalt.err (!%p810_p0)
}
 0x12e   :  { %s814_s24 = scalar_lea.hbm %s988_s3, 64 }
 0x12f   :  { %p815_p1 = scmp.ne.s32.totalorder %s988_s3, %s814_s24  ;;  %p818_p2 = scmp.lt.u32.totalorder %s814_s24, %s988_s3 }
 0x131   :  { %p820_p3 = pnand %p818_p2, %p815_p1 }
 0x133   :  { %823 = shalt.err (!%p820_p3)
}
 0x134   :  { %664 = dma.vmem_to_hbm [thread:$0]  %s662_s10, 64, %s988_s3, [#allocation9]  }
 0x135   :  { %828 = dma.done.wait [#allocation4], 64  }
 0x136   :  { %829 = vsyncadd [#allocation4], 4294967232 }
 0x137   :  { %830 = dma.done.wait [#allocation9], 64  }
 0x138   :  { %831 = vsyncadd [#allocation9], 4294967232 }
 0x139   :  { %671 = vsyncpa [#allocation3], 1 }
 0x13a   :  { %672 = vsyncpa [#allocation6], 1 }
 0x13b   :  { %673 = vsyncpa [#allocation4], 1 }
 0x13c   :  { %674 = vsyncpa [#allocation9], 1 }

</bundles_post_ra>
